<compile_context>
chip_gen: v7x
topology: tpu7x:2x2x1
jax: 0.10.0
libtpu: 0.0.40
codegen_flags: <defaults>
</compile_context>

<pallas_src>
import functools

import jax
import jax.numpy as jnp
from jax import lax
from jax.experimental import pallas as pl
from jax.experimental.pallas import tpu as pltpu


def _round_up(x, m):
    return ((x + m - 1) // m) * m


def _gelu_f32(x, approximate):
    if approximate:
        # tanh-approx GELU: the tanh goes to the EUP slot (co-issues with MXU).
        c = 0.7978845608028654  # sqrt(2/pi)
        return 0.5 * x * (1.0 + jnp.tanh(c * (x + 0.044715 * (x * x * x))))
    # PyTorch F.gelu default = exact erf-based GELU.
    return 0.5 * x * (1.0 + lax.erf(x * 0.7071067811865476))


def mlp_kernel(x_ref, w1_ref, b1_ref, w2_ref, b2_ref, o_ref, acc_ref, *,
               h_chunk, approximate_gelu):
    # x_ref: (tm, Dp), w1_ref: (Dp, Hp), b1_ref: (1, Hp),
    # w2_ref: (Hp, Dp), b2_ref: (1, Dp), o_ref: (tm, Dp), acc_ref: (tm, Dp) f32
    Hp = w1_ref.shape[1]
    x = x_ref[...]
    # Chunk the hidden dim: the f32 intermediate stays at (tm, h_chunk) and the
    # GELU of one chunk hides under the matmuls of the neighbouring chunks.
    for c, c0 in enumerate(range(0, Hp, h_chunk)):
        c1 = min(c0 + h_chunk, Hp)
        # fc1 chunk: native-dtype operands straight to the MXU, f32 accumulate.
        h = jnp.dot(x, w1_ref[:, c0:c1], preferred_element_type=jnp.float32)
        h = h + b1_ref[:, c0:c1].astype(jnp.float32)
        h = _gelu_f32(h, approximate_gelu)
        # TODO(synk): dropout omitted (identity) — matches eval / drop_rate=0.
        # fc2 chunk: cast the intermediate back to the MXU-native weight dtype.
        part = jnp.dot(h.astype(w2_ref.dtype), w2_ref[c0:c1, :],
                       preferred_element_type=jnp.float32)
        if c == 0:
            acc_ref[...] = part
        else:
            acc_ref[...] += part
    o_ref[...] = (acc_ref[...] + b2_ref[...].astype(jnp.float32)).astype(o_ref.dtype)


def _vmem_caps():
    # Per-generation budget: ~110 MiB clamp on v5e/v6e (128 MiB physical VMEM),
    # ~56 MiB on v7x (64 MiB per TC).  Conservative fallback if the query fails.
    try:
        phys = int(getattr(pltpu.get_tpu_info(), "vmem_capacity_bytes", 64 << 20))
    except Exception:
        phys = 64 << 20
    limit_cap = min(phys - (8 << 20), 110 << 20)
    budget = limit_cap - (8 << 20)  # headroom for compiler internal scratch
    return budget, limit_cap


@functools.partial(
    jax.jit,
    static_argnames=("tm", "h_chunk", "approximate_gelu", "bf16_compute"))
def mlp_forward(x, w1, b1, w2, b2, *, tm=512, h_chunk=512,
                approximate_gelu=True, bf16_compute=False):
    """x: (B, N, D); w1: (D, H); b1: (H,); w2: (H, D); b2: (D,)."""
    B, N, D = x.shape
    H = w1.shape[1]
    M = B * N
    out_dtype = x.dtype

    if bf16_compute:
        # v5e: f32 matmul on the MXU is multi-pass emulation; feed bf16
        # operands once from the wrapper (accumulation stays f32 in-kernel).
        x = x.astype(jnp.bfloat16)
        w1 = w1.astype(jnp.bfloat16)
        w2 = w2.astype(jnp.bfloat16)

    # Lane-pad feature dims to multiples of 128 (lane-dense loads/stores).
    Dp = _round_up(D, 128)
    Hp = _round_up(H, 128)
    th = min(_round_up(min(h_chunk, Hp), 128), Hp)

    w_item = jnp.dtype(w1.dtype).itemsize
    x_item = jnp.dtype(x.dtype).itemsize
    o_item = jnp.dtype(out_dtype).itemsize

    # Residents are single-buffered (pl.Buffered(1)); x/out tiles are
    # double-buffered by the pipeline; plus f32 accumulator and the per-chunk
    # intermediate (f32 value + its low-precision cast).
    weight_bytes = (Dp * Hp + Hp * Dp + Hp + Dp) * w_item

    def vmem_bytes(rows):
        io = 2 * rows * Dp * (x_item + o_item)
        acc = rows * Dp * 4
        inter = rows * th * (4 + w_item)
        return weight_bytes + io + acc + inter

    budget, limit_cap = _vmem_caps()

    # Row tile: multiple of 16 so both f32 (8-row) and bf16 (16-row) sublane
    # tilings are satisfied; never larger than the padded problem.
    tm = max(16, min(tm, _round_up(M, 16)))
    while tm > 16 and vmem_bytes(tm) > budget:
        tm = max(16, _round_up(tm // 2, 16))
    # Megacore (v7x): keep >= 2 row tiles when there is enough work so the
    # "parallel" grid axis actually splits across both TensorCores.
    while tm > 256 and M > 256 and tm >= _round_up(M, 16):
        tm = _round_up(tm // 2, 16)

    # TODO(synk): if the single-buffered weights alone exceed `limit_cap`
    # (e.g. f32 D=1024/H=4096 on v7x), add a second "arbitrary" grid axis over
    # Hp with a pl.when-guarded accumulator instead of failing to compile.
    vmem_limit = int(min(max(vmem_bytes(tm) + (8 << 20), 32 << 20), limit_cap))

    Mp = _round_up(M, tm)

    # Conditional padding: lane-aligned ViT dims take the zero-copy path.
    x2d = x.reshape(M, D)
    if Mp != M or Dp != D:
        x2d = jnp.pad(x2d, ((0, Mp - M), (0, Dp - D)))
    w1p = jnp.pad(w1, ((0, Dp - D), (0, Hp - H))) if (Dp != D or Hp != H) else w1
    w2p = jnp.pad(w2, ((0, Hp - H), (0, Dp - D))) if (Dp != D or Hp != H) else w2
    b1p = (jnp.pad(b1, (0, Hp - H)) if Hp != H else b1).reshape(1, Hp)
    b2p = (jnp.pad(b2, (0, Dp - D)) if Dp != D else b2).reshape(1, Dp)

    kernel = functools.partial(mlp_kernel, h_chunk=th,
                               approximate_gelu=approximate_gelu)

    # Constant index_map -> never re-DMA'd; one buffer is enough.
    resident = dict(pipeline_mode=pl.Buffered(1))

    out2d = pl.pallas_call(
        kernel,
        out_shape=jax.ShapeDtypeStruct((Mp, Dp), out_dtype),
        grid_spec=pltpu.PrefetchScalarGridSpec(
            num_scalar_prefetch=0,
            grid=(Mp // tm,),
            in_specs=[
                pl.BlockSpec((tm, Dp), lambda i: (i, 0)),              # x rows
                pl.BlockSpec((Dp, Hp), lambda i: (0, 0), **resident),  # w1
                pl.BlockSpec((1, Hp), lambda i: (0, 0), **resident),   # b1
                pl.BlockSpec((Hp, Dp), lambda i: (0, 0), **resident),  # w2
                pl.BlockSpec((1, Dp), lambda i: (0, 0), **resident),   # b2
            ],
            out_specs=pl.BlockSpec((tm, Dp), lambda i: (i, 0)),
            scratch_shapes=[pltpu.VMEM((tm, Dp), jnp.float32)],
        ),
        compiler_params=pltpu.CompilerParams(
            dimension_semantics=("parallel",),
            vmem_limit_bytes=vmem_limit,
        ),
    )(x2d, w1p, b1p, w2p, b2p)

    if Mp != M or Dp != D:
        out2d = out2d[:M, :D]
    return out2d.reshape(B, N, D)


def mlp_reference(x, w1, b1, w2, b2, approximate_gelu=False):
    h = jnp.dot(x, w1) + b1
    h = _gelu_f32(h, approximate_gelu)
    return jnp.dot(h, w2) + b2


if __name__ == "__main__":
    root_key = jax.random.PRNGKey(0)

    def make_case(case, B, N, D, H):
        key = jax.random.fold_in(root_key, case)
        kx, kw1, kb1, kw2, kb2 = jax.random.split(key, 5)
        lim1, lim2 = 1.0 / (D ** 0.5), 1.0 / (H ** 0.5)
        x = jax.random.normal(kx, (B, N, D), dtype=jnp.float32)
        # PyTorch Linear stores weight as (out, in); we keep the (in, out)
        # transpose so the kernel computes x @ W directly.
        w1 = jax.random.uniform(kw1, (D, H), minval=-lim1, maxval=lim1, dtype=jnp.float32)
        b1 = jax.random.uniform(kb1, (H,), minval=-lim1, maxval=lim1, dtype=jnp.float32)
        w2 = jax.random.uniform(kw2, (H, D), minval=-lim2, maxval=lim2, dtype=jnp.float32)
        b2 = jax.random.uniform(kb2, (D,), minval=-lim2, maxval=lim2, dtype=jnp.float32)
        return x, w1, b1, w2, b2

    def run_case(case, B, N, D, H, dtype, atol, rtol, **kwargs):
        x, w1, b1, w2, b2 = make_case(case, B, N, D, H)
        ref = mlp_reference(x, w1, b1, w2, b2,
                            approximate_gelu=kwargs.get("approximate_gelu", True))
        args = [a.astype(dtype) for a in (x, w1, b1, w2, b2)]
        out = jax.block_until_ready(mlp_forward(*args, **kwargs))
        assert out.shape == (B, N, D)
        assert out.dtype == dtype
        assert jnp.allclose(out.astype(jnp.float32), ref, atol=atol, rtol=rtol), (
            f"mismatch vs reference (B={B}, N={N}, D={D}, H={H}, dtype={dtype}, {kwargs})")

    # Exact (PyTorch-default erf) GELU path, f32, small module-consistent shape.
    run_case(0, B=2, N=8, D=32, H=64, dtype=jnp.float32, atol=1e-5, rtol=1e-5,
             approximate_gelu=False)
    # Default (tanh-approx / EUP) GELU path + ragged token count and non-128
    # feature dims exercise the padding path (e.g. ViT's 197 tokens).
    run_case(1, B=2, N=13, D=48, H=96, dtype=jnp.float32, atol=2e-4, rtol=2e-4)
    # Hidden-dim chunking path: Hp=256 with h_chunk=128 -> 2 accumulated chunks.
    run_case(2, B=2, N=8, D=64, H=200, dtype=jnp.float32, atol=2e-4, rtol=2e-4,
             h_chunk=128)
    # Native bf16 path: operands feed the MXU directly with f32 accumulation.
    run_case(3, B=2, N=8, D=32, H=64, dtype=jnp.bfloat16, atol=2e-2, rtol=2e-2)

    print("KERNEL_OK")
</pallas_src>

<mosaic_0001>
module attributes {stable_mosaic.version = 11 : i64} {
  func.func @mlp_kernel(%arg0: i32, %arg1: memref<16x128xf32, #tpu.memory_space<vmem>>, %arg2: memref<128x128xf32, #tpu.memory_space<vmem>>, %arg3: memref<1x128xf32, #tpu.memory_space<vmem>>, %arg4: memref<128x128xf32, #tpu.memory_space<vmem>>, %arg5: memref<1x128xf32, #tpu.memory_space<vmem>>, %arg6: memref<16x128xf32, #tpu.memory_space<vmem>>, %arg7: memref<16x128xf32, #tpu.memory_space<vmem>>) attributes {dimension_semantics = [#tpu.dimension_semantics<parallel>], iteration_bounds = array<i64: 1>, scalar_prefetch = 0 : i64, scratch_operands = 1 : i64, tpu.core_type = #tpu.core_type<tc>, window_params = [{transform_indices = @transform_0, window_bounds = array<i64: 16, 128>}, {pipeline_mode = #tpu.pipeline_mode<synchronous>, transform_indices = @transform_1, window_bounds = array<i64: 128, 128>}, {pipeline_mode = #tpu.pipeline_mode<synchronous>, transform_indices = @transform_2, window_bounds = array<i64: 1, 128>}, {pipeline_mode = #tpu.pipeline_mode<synchronous>, transform_indices = @transform_3, window_bounds = array<i64: 128, 128>}, {pipeline_mode = #tpu.pipeline_mode<synchronous>, transform_indices = @transform_4, window_bounds = array<i64: 1, 128>}, {transform_indices = @transform_5, window_bounds = array<i64: 16, 128>}]} {
    %c0 = arith.constant 0 : index
    %c0_0 = arith.constant 0 : index
    %0 = vector.load %arg1[%c0, %c0_0] : memref<16x128xf32, #tpu.memory_space<vmem>>, vector<16x128xf32>
    %c0_1 = arith.constant 0 : index
    %c0_2 = arith.constant 0 : index
    %1 = vector.load %arg2[%c0_1, %c0_2] : memref<128x128xf32, #tpu.memory_space<vmem>>, vector<128x128xf32>
    %cst = arith.constant dense<0.000000e+00> : vector<16x128xf32>
    %2 = tpu.matmul %0, %1, %cst {dimension_numbers = #tpu.dot_dimension_numbers<[1], [0], [0], [1], [0, 0, 1, 1], [], []>} : vector<16x128xf32>, vector<128x128xf32>, vector<16x128xf32> -> vector<16x128xf32>
    %c0_3 = arith.constant 0 : index
    %c0_4 = arith.constant 0 : index
    %3 = vector.load %arg3[%c0_3, %c0_4] : memref<1x128xf32, #tpu.memory_space<vmem>>, vector<1x128xf32>
    %4 = vector.broadcast %3 : vector<1x128xf32> to vector<16x128xf32>
    %5 = arith.addf %2, %4 : vector<16x128xf32>
    %cst_5 = arith.constant 5.000000e-01 : f32
    %6 = vector.broadcast %cst_5 : f32 to vector<16x128xf32>
    %7 = arith.mulf %6, %5 : vector<16x128xf32>
    %cst_6 = arith.constant 0.707106769 : f32
    %8 = vector.broadcast %cst_6 : f32 to vector<16x128xf32>
    %9 = arith.mulf %5, %8 : vector<16x128xf32>
    %10 = math.erf %9 : vector<16x128xf32>
    %cst_7 = arith.constant 1.000000e+00 : f32
    %11 = vector.broadcast %cst_7 : f32 to vector<16x128xf32>
    %12 = arith.addf %11, %10 : vector<16x128xf32>
    %13 = arith.mulf %7, %12 : vector<16x128xf32>
    %c0_8 = arith.constant 0 : index
    %c0_9 = arith.constant 0 : index
    %14 = vector.load %arg4[%c0_8, %c0_9] : memref<128x128xf32, #tpu.memory_space<vmem>>, vector<128x128xf32>
    %cst_10 = arith.constant dense<0.000000e+00> : vector<16x128xf32>
    %15 = tpu.matmul %13, %14, %cst_10 {dimension_numbers = #tpu.dot_dimension_numbers<[1], [0], [0], [1], [0, 0, 1, 1], [], []>} : vector<16x128xf32>, vector<128x128xf32>, vector<16x128xf32> -> vector<16x128xf32>
    %c0_11 = arith.constant 0 : index
    %c0_12 = arith.constant 0 : index
    %16 = vector.load %arg7[%c0_11, %c0_12] : memref<16x128xf32, #tpu.memory_space<vmem>>, vector<16x128xf32>
    tpu.vector_store %arg7[%c0_11, %c0_12], %15 {strides = array<i32>} : memref<16x128xf32, #tpu.memory_space<vmem>>, vector<16x128xf32>,
    %c0_13 = arith.constant 0 : index
    %c0_14 = arith.constant 0 : index
    %17 = vector.load %arg7[%c0_13, %c0_14] : memref<16x128xf32, #tpu.memory_space<vmem>>, vector<16x128xf32>
    %c0_15 = arith.constant 0 : index
    %c0_16 = arith.constant 0 : index
    %18 = vector.load %arg5[%c0_15, %c0_16] : memref<1x128xf32, #tpu.memory_space<vmem>>, vector<1x128xf32>
    %19 = vector.broadcast %18 : vector<1x128xf32> to vector<16x128xf32>
    %20 = arith.addf %17, %19 : vector<16x128xf32>
    %c0_17 = arith.constant 0 : index
    %c0_18 = arith.constant 0 : index
    %21 = vector.load %arg6[%c0_17, %c0_18] : memref<16x128xf32, #tpu.memory_space<vmem>>, vector<16x128xf32>
    tpu.vector_store %arg6[%c0_17, %c0_18], %20 {strides = array<i32>} : memref<16x128xf32, #tpu.memory_space<vmem>>, vector<16x128xf32>,
    return
  }
  func.func @transform_0(%arg0: i32) -> (i32, i32) {
    %c0_i32 = arith.constant 0 : i32
    %c0_i32_0 = arith.constant 0 : i32
    return %arg0, %c0_i32 : i32, i32
  }
  func.func @transform_1(%arg0: i32) -> (i32, i32) {
    %c0_i32 = arith.constant 0 : i32
    %c0_i32_0 = arith.constant 0 : i32
    %c0_i32_1 = arith.constant 0 : i32
    return %c0_i32, %c0_i32_0 : i32, i32
  }
  func.func @transform_2(%arg0: i32) -> (i32, i32) {
    %c0_i32 = arith.constant 0 : i32
    %c0_i32_0 = arith.constant 0 : i32
    %c0_i32_1 = arith.constant 0 : i32
    return %c0_i32, %c0_i32_0 : i32, i32
  }
  func.func @transform_3(%arg0: i32) -> (i32, i32) {
    %c0_i32 = arith.constant 0 : i32
    %c0_i32_0 = arith.constant 0 : i32
    %c0_i32_1 = arith.constant 0 : i32
    return %c0_i32, %c0_i32_0 : i32, i32
  }
  func.func @transform_4(%arg0: i32) -> (i32, i32) {
    %c0_i32 = arith.constant 0 : i32
    %c0_i32_0 = arith.constant 0 : i32
    %c0_i32_1 = arith.constant 0 : i32
    return %c0_i32, %c0_i32_0 : i32, i32
  }
  func.func @transform_5(%arg0: i32) -> (i32, i32) {
    %c0_i32 = arith.constant 0 : i32
    %c0_i32_0 = arith.constant 0 : i32
    return %arg0, %c0_i32 : i32, i32
  }
}

</mosaic_0001>

<bundles_post_ra>
// kernel: mlp_forward.1
= control target key start
LH: loop header
LB: loop body
LE: loop exit
PB: predicated region body
PF: predicated region fallthrough
CT: control target
= control target key end

     0   :  { %s560_s1 = inlined_call_operand.vmem [shape: f32[128,128], index: 1, kind: input, shape index: {}]   ;;  %s561_s0 = inlined_call_operand.vmem [shape: f32[16,128], index: 0, kind: input, shape index: {}]   ;;  %s562_s3 = inlined_call_operand.vmem [shape: f32[128,128], index: 3, kind: input, shape index: {}]   ;;  %s563_s2 = inlined_call_operand.vmem [shape: f32[1,128], index: 2, kind: input, shape index: {}]   ;;  %s564_s4 = inlined_call_operand.vmem [shape: f32[1,128], index: 4, kind: input, shape index: {}]   ;;  %s565_s5 = inlined_call_operand.vmem [shape: f32[16,128], index: 5, kind: output, shape index: {}]  }
   0x1   :  { %v22_v0 = vld [vmem:[%s560_s1] sm:$0xff]  ;;  %v23_v1 = vld [vmem:[%s560_s1 + $0x8] sm:$0xff]  ;;  %v24_v2 = vld [vmem:[%s560_s1 + $0x10] sm:$0xff] }
   0x2   :  { %v348_v3 = vpack.c.bf16 %v23_v1, %v22_v0  ;;  %v25_v4 = vld [vmem:[%s560_s1 + $0x18] sm:$0xff]  ;;  %v26_v6 = vld [vmem:[%s560_s1 + $0x20] sm:$0xff]  ;;  %v27_v7 = vld [vmem:[%s560_s1 + $0x28] sm:$0xff] }
   0x3   :  { %v352_v5 = vpack.c.bf16 %v25_v4, %v24_v2  ;;  %v356_v8 = vpack.c.bf16 %v27_v7, %v26_v6  ;;  %v28_v9 = vld [vmem:[%s560_s1 + $0x30] sm:$0xff]  ;;  %v29_v10 = vld [vmem:[%s560_s1 + $0x38] sm:$0xff]  ;;  %v20_v11 = vld [vmem:[%s561_s0] sm:$0xff] }
   0x4   :  { %349 = vmatprep.subr.bf16.mxu0 %v348_v3  ;;  %310 = vmatprep.mubr.f32.mxu0 %v20_v11  ;;  %v130_v12 = vld [vmem:[%s562_s3] sm:$0xff]  ;;  %v131_v13 = vld [vmem:[%s562_s3 + $0x8] sm:$0xff]  ;;  %v132_v14 = vld [vmem:[%s562_s3 + $0x10] sm:$0xff]  ;;  %v360_v20 = vpack.c.bf16 %v29_v10, %v28_v9 }
   0x5   :  { %351 = vmatpush3.bf16.msra.mxu0 %v348_v3  ;;  %v380_v15 = vpack.c.bf16 %v131_v13, %v130_v12  ;;  %v133_v16 = vld [vmem:[%s562_s3 + $0x18] sm:$0xff]  ;;  %v134_v18 = vld [vmem:[%s562_s3 + $0x20] sm:$0xff]  ;;  %v135_v19 = vld [vmem:[%s562_s3 + $0x28] sm:$0xff] }
   0x6   :  { %353 = vmatprep.subr.bf16.mxu0 %v352_v5  ;;  %v384_v17 = vpack.c.bf16 %v133_v16, %v132_v14  ;;  %v30_v21 = vld [vmem:[%s560_s1 + $0x40] sm:$0xff]  ;;  %v31_v22 = vld [vmem:[%s560_s1 + $0x48] sm:$0xff]  ;;  %v388_v23 = vpack.c.bf16 %v135_v19, %v134_v18  ;;  %v32_v25 = vld [vmem:[%s560_s1 + $0x50] sm:$0xff] }
   0x7   :  { %381 = vmatprep.subr.bf16.mxu1 %v380_v15  ;;  %v364_v24 = vpack.c.bf16 %v31_v22, %v30_v21  ;;  %v33_v26 = vld [vmem:[%s560_s1 + $0x58] sm:$0xff]  ;;  %v34_v28 = vld [vmem:[%s560_s1 + $0x60] sm:$0xff]  ;;  %v35_v29 = vld [vmem:[%s560_s1 + $0x68] sm:$0xff] }
   0x8   :  { %383 = vmatpush3.bf16.msra.mxu1 %v380_v15  ;;  %v368_v27 = vpack.c.bf16 %v33_v26, %v32_v25  ;;  %v372_v30 = vpack.c.bf16 %v35_v29, %v34_v28  ;;  %v36_v31 = vld [vmem:[%s560_s1 + $0x70] sm:$0xff]  ;;  %v37_v32 = vld [vmem:[%s560_s1 + $0x78] sm:$0xff]  ;;  %v21_v34 = vld [vmem:[%s561_s0 + $0x8] sm:$0xff] }
   0x9   :  { %355 = vmatpush3.bf16.msra.mxu0 %v352_v5  ;;  %385 = vmatprep.subr.bf16.mxu1 %v384_v17  ;;  %v376_v33 = vpack.c.bf16 %v37_v32, %v36_v31  ;;  %v136_v35 = vld [vmem:[%s562_s3 + $0x30] sm:$0xff]  ;;  %v137_v36 = vld [vmem:[%s562_s3 + $0x38] sm:$0xff]  ;;  %v138_v38 = vld [vmem:[%s562_s3 + $0x40] sm:$0xff] }
   0xa   :  { %357 = vmatprep.subr.bf16.mxu0 %v356_v8  ;;  %v392_v37 = vpack.c.bf16 %v137_v36, %v136_v35  ;;  %v139_v39 = vld [vmem:[%s562_s3 + $0x48] sm:$0xff]  ;;  %v140_v41 = vld [vmem:[%s562_s3 + $0x50] sm:$0xff]  ;;  %v141_v42 = vld [vmem:[%s562_s3 + $0x58] sm:$0xff] }
   0xb   :  { %v396_v40 = vpack.c.bf16 %v139_v39, %v138_v38  ;;  %v400_v43 = vpack.c.bf16 %v141_v42, %v140_v41  ;;  %v142_v44 = vld [vmem:[%s562_s3 + $0x60] sm:$0xff]  ;;  %v143_v45 = vld [vmem:[%s562_s3 + $0x68] sm:$0xff]  ;;  %v144_v47 = vld [vmem:[%s562_s3 + $0x70] sm:$0xff] }
   0xc   :  { %387 = vmatpush3.bf16.msra.mxu1 %v384_v17  ;;  %v404_v46 = vpack.c.bf16 %v143_v45, %v142_v44  ;;  %v145_v48 = vld [vmem:[%s562_s3 + $0x78] sm:$0xff]  ;;  %v240_v50 = vld [vmem:[%s563_s2] ss:$0 sm:$0xff] }
   0xd   :  { %359 = vmatpush3.bf16.msra.mxu0 %v356_v8  ;;  %389 = vmatprep.subr.bf16.mxu1 %v388_v23  ;;  %v408_v49 = vpack.c.bf16 %v145_v48, %v144_v47  ;;  %v241_v1 = vld [vmem:[%s564_s4] ss:$0 sm:$0xff] }
   0xe   :  { %361 = vmatprep.subr.bf16.mxu0 %v360_v20 }
  0x10   :  { %391 = vmatpush3.bf16.msra.mxu1 %v388_v23 }
  0x11   :  { %363 = vmatpush3.bf16.msra.mxu0 %v360_v20  ;;  %393 = vmatprep.subr.bf16.mxu1 %v392_v37 }
  0x12   :  { %365 = vmatprep.subr.bf16.mxu0 %v364_v24 }
  0x14   :  { %395 = vmatpush3.bf16.msra.mxu1 %v392_v37 }
  0x15   :  { %367 = vmatpush3.bf16.msra.mxu0 %v364_v24  ;;  %397 = vmatprep.subr.bf16.mxu1 %v396_v40 }
  0x16   :  { %369 = vmatprep.subr.bf16.mxu0 %v368_v27 }
  0x18   :  { %399 = vmatpush3.bf16.msra.mxu1 %v396_v40 }
  0x19   :  { %371 = vmatpush3.bf16.msra.mxu0 %v368_v27  ;;  %401 = vmatprep.subr.bf16.mxu1 %v400_v43 }
  0x1a   :  { %373 = vmatprep.subr.bf16.mxu0 %v372_v30 }
  0x1c   :  { %403 = vmatpush3.bf16.msra.mxu1 %v400_v43 }
  0x1d   :  { %375 = vmatpush3.bf16.msra.mxu0 %v372_v30  ;;  %405 = vmatprep.subr.bf16.mxu1 %v404_v46 }
  0x1e   :  { %377 = vmatprep.subr.bf16.mxu0 %v376_v33 }
  0x20   :  { %407 = vmatpush3.bf16.msra.mxu1 %v404_v46 }
  0x21   :  { %379 = vmatpush3.bf16.msra.mxu0 %v376_v33  ;;  %409 = vmatprep.subr.bf16.mxu1 %v408_v49 }
  0x24   :  { %311 = vmatmul.mubr.f32.vlgmr.msra.gmra.mrb[0].mxu0 %v21_v34  ;;  %411 = vmatpush3.bf16.msra.mxu1 %v408_v49 }
  0xf7   :  { %v312_v51 = vpop.f32.mrb[0].mxu0 }
  0xf8   :  { %v117_v52 = vadd.f32 %v312_v51, %v240_v50  ;;  %v111_v53 = vpop.f32.mrb[1].mxu0 }
  0xf9   :  { %v112_v54 = vadd.f32 %v240_v50, %v111_v53 }
  0xfa   :  { %v123_v55 = vmul.f32 0.70710677, %v117_v52  ;;  %v121_v62 = vmul.f32 0.5, %v117_v52 }
  0xfb   :  { %v122_v56 = vmul.f32 0.70710677, %v112_v54  ;;  %v120_v60 = vmul.f32 0.5, %v112_v54 }
  0xfc   :  { %412 = verf.f32 %v123_v55 }
  0xfd   :  { %414 = verf.f32 %v122_v56 }
 0x106   :  { %v413_v57 = vpop.eup %412 }
 0x107   :  { %v415_v58 = vpop.eup %414  ;;  %v127_v59 = vadd.f32 1.0, %v413_v57 }
 0x108   :  { %v126_v61 = vadd.f32 1.0, %v415_v58 }
 0x109   :  { %v129_v0 = vmul.f32 %v127_v59, %v121_v62 }
 0x10a   :  { %v128_v63 = vmul.f32 %v126_v61, %v120_v60 }
 0x10c   :  { %345 = vmatprep.mubr.f32.mxu1 %v128_v63 }
 0x10d   :  { %346 = vmatmul.mubr.f32.vlgmr.msra.gmra.mrb[0].mxu1 %v129_v0 }
 0x1e0   :  { %v347_v2 = vpop.f32.mrb[0].mxu1 }
 0x1e1   :  { %v233_v3 = vadd.f32 %v347_v2, %v241_v1  ;;  %v212_v4 = vpop.f32.mrb[1].mxu1 }
 0x1e2   :  { %v232_v5 = vadd.f32 %v241_v1, %v212_v4 }
 0x1e3   :  { %235 = vst [vmem:[%s565_s5 + $0x8] sm:$0xff] %v233_v3 }
 0x1e4   :  { %234 = vst [vmem:[%s565_s5] sm:$0xff] %v232_v5 }

</bundles_post_ra>
